<compile_context>
chip_gen: v7x
topology: tpu7x:2x2x1
jax: 0.10.0
libtpu: 0.0.40
codegen_flags: <defaults>
</compile_context>

<pallas_src>
import math
from functools import partial

import jax
import jax.numpy as jnp
from jax import lax
from jax.experimental import pallas as pl
from jax.experimental.pallas import tpu as pltpu


def _full_attention_kernel(q_ref, k_ref, v_ref, vout_ref, *a_refs,
                           scale, compute_dtype):
    # q_ref: (1, TL, E), k_ref: (1, S, E), v_ref: (1, S, D)
    # vout_ref: (1, TL, D); optional a_refs[0]: (1, TL, S)
    q = (q_ref[0] * scale).astype(compute_dtype)   # fold scale into Q (TL*E)
    k = k_ref[0].astype(compute_dtype)              # (S, E)
    v = v_ref[0].astype(compute_dtype)              # (S, D)

    # scores[l, s] = sum_e q[l, e] * k[s, e]  (contract on E; no explicit k.T)
    scores = lax.dot_general(
        q, k, dimension_numbers=(((1,), (1,)), ((), ())),
        preferred_element_type=jnp.float32)          # (TL, S) f32

    # numerically-stable softmax over S
    m = jnp.max(scores, axis=-1, keepdims=True)
    e = jnp.exp(scores - m)                          # (TL, S) f32
    denom = jnp.sum(e, axis=-1, keepdims=True)       # (TL, 1)
    inv = pl.reciprocal(denom, approx=True)          # EUP slot
    inv = inv * (2.0 - denom * inv)                  # 1 Newton step, TL elems

    if not a_refs:
        # Fast path: fold normalization after the PV matmul (TL*D multiplies
        # instead of TL*S; no (TL, S) attn temp).
        out = jnp.dot(e.astype(compute_dtype), v,
                      preferred_element_type=jnp.float32) * inv
    else:
        a_ref = a_refs[0]
        if jnp.dtype(a_ref.dtype) == jnp.dtype(compute_dtype):
            # Normalize + cast once; reuse the same tile for PV input and A.
            attn = (e * inv).astype(compute_dtype)   # (TL, S)
            a_ref[0] = attn
            out = jnp.dot(attn, v, preferred_element_type=jnp.float32)
        else:
            attn = e * inv                           # (TL, S) f32
            a_ref[0] = attn.astype(a_ref.dtype)
            out = jnp.dot(attn.astype(compute_dtype), v,
                          preferred_element_type=jnp.float32)

    vout_ref[0] = out.astype(vout_ref.dtype)


def _round_up(x, m):
    return ((x + m - 1) // m) * m


def _sublane_multiple(itemsize):
    return max(8, 32 // int(itemsize))


def _vmem_capacity_bytes():
    try:
        cap = int(getattr(pltpu.get_tpu_info(), "vmem_capacity_bytes", 0))
        if cap > 0:
            return cap
    except Exception:
        pass
    return 64 << 20  # conservative (v7x-sized) fallback


def _estimate_vmem_bytes(tl, S, E, D, in_itemsize, a_itemsize, with_a,
                         kv_buffers=2):
    # pipelined blocks + f32 in-kernel temporaries (conservative)
    blocks = 2 * in_itemsize * (tl * E + tl * D)
    blocks += kv_buffers * in_itemsize * (S * E + S * D)
    if with_a:
        blocks += 2 * a_itemsize * tl * S
    temps = 4 * tl * S * 4 + 4 * tl * D
    return blocks + temps


def _pick_block_l(L, S, E, D, in_itemsize, a_itemsize, with_a, budget_bytes):
    req = _sublane_multiple(in_itemsize)
    l_pad = _round_up(L, req)
    candidates = [t for t in (2048, 1024, 512, 256, 128, 64, 32, 16, 8)
                  if t % req == 0 and t <= l_pad]
    if not candidates:
        return l_pad
    for tl in candidates:
        if _estimate_vmem_bytes(tl, S, E, D, in_itemsize, a_itemsize,
                                with_a) <= budget_bytes:
            return tl
    return candidates[-1]


def full_attention(queries, keys, values, scale=None, *,
                   return_attention=True, attn_dtype=None,
                   compute_dtype=None, block_l=None, kv_single_buffer=None):
    """Pallas TPU FullAttention forward.

    Returns (V, A) by default (module semantics); V only when
    return_attention=False.  attn_dtype=bf16 is recommended when the A map is
    only needed approximately (halves the dominant HBM writeback).
    compute_dtype=bf16 (with f32 inputs) trades a little precision for a
    3-8x faster MXU path.
    """
    B, L, E = queries.shape
    _, S, _ = keys.shape
    _, _, D = values.shape
    scale = scale if scale is not None else 1.0 / math.sqrt(E)
    in_dtype = jnp.dtype(queries.dtype)
    attn_dtype = jnp.dtype(attn_dtype) if attn_dtype is not None else in_dtype
    compute_dtype = (jnp.dtype(compute_dtype)
                     if compute_dtype is not None else in_dtype)

    in_itemsize = in_dtype.itemsize
    a_itemsize = attn_dtype.itemsize
    req = _sublane_multiple(in_itemsize)

    # Generation-aware VMEM budgets.
    vmem_cap = _vmem_capacity_bytes()
    if vmem_cap >= (100 << 20):          # v5e / v6e (128 MiB)
        block_budget = 80 << 20
        vmem_ceiling = 100 << 20
    else:                                # v7x (64 MiB per TC)
        block_budget = 24 << 20
        vmem_ceiling = 46 << 20

    if block_l is None:
        block_l = _pick_block_l(L, S, E, D, in_itemsize, a_itemsize,
                                return_attention, budget_bytes=block_budget)
        # Make sure both 'parallel' grid axes give >= 2 programs (2-TC shard).
        while (B * pl.cdiv(L, block_l) < 2 and block_l % 2 == 0
               and (block_l // 2) % req == 0):
            block_l //= 2
    else:
        block_l = max(req, _round_up(int(block_l), req))

    num_l = pl.cdiv(L, block_l)
    L_pad = num_l * block_l

    # Single-buffer K/V (constant over the l axis) only on small-VMEM parts
    # when the blocks are big enough to matter and amortized over >= 2 tiles.
    kv_block_bytes = (S * E + S * D) * in_itemsize
    if kv_single_buffer is None:
        kv_single_buffer = (vmem_cap < (100 << 20) and num_l >= 2
                            and kv_block_bytes >= (1 << 20))
    kv_buffers = 1 if kv_single_buffer else 2
    kv_kwargs = dict(pipeline_mode=pl.Buffered(1)) if kv_single_buffer else {}

    est = _estimate_vmem_bytes(block_l, S, E, D, in_itemsize, a_itemsize,
                               return_attention, kv_buffers=kv_buffers)
    vmem_limit = int(min(max(est + (8 << 20), 32 << 20), vmem_ceiling))

    q_in = queries
    if L_pad != L:
        q_in = jnp.pad(queries, ((0, 0), (0, L_pad - L), (0, 0)))

    in_specs = [
        pl.BlockSpec((1, block_l, E), lambda b, l: (b, l, 0)),
        pl.BlockSpec((1, S, E), lambda b, l: (b, 0, 0), **kv_kwargs),
        pl.BlockSpec((1, S, D), lambda b, l: (b, 0, 0), **kv_kwargs),
    ]
    out_specs = [pl.BlockSpec((1, block_l, D), lambda b, l: (b, l, 0))]
    out_shape = [jax.ShapeDtypeStruct((B, L_pad, D), queries.dtype)]
    if return_attention:
        out_specs.append(pl.BlockSpec((1, block_l, S), lambda b, l: (b, l, 0)))
        out_shape.append(jax.ShapeDtypeStruct((B, L_pad, S), attn_dtype))

    flops = 2 * B * L_pad * S * (E + D)
    bytes_accessed = (B * L_pad * E + B * S * E + B * S * D
                      + B * L_pad * D) * in_itemsize
    if return_attention:
        bytes_accessed += B * L_pad * S * a_itemsize
    cost = pl.CostEstimate(flops=flops,
                           transcendentals=B * L_pad * S + B * L_pad,
                           bytes_accessed=bytes_accessed)

    kernel = partial(_full_attention_kernel, scale=scale,
                     compute_dtype=compute_dtype)

    grid_spec = pltpu.PrefetchScalarGridSpec(
        num_scalar_prefetch=0,
        grid=(B, num_l),
        in_specs=in_specs,
        out_specs=out_specs,
    )

    outs = pl.pallas_call(
        kernel,
        grid_spec=grid_spec,
        out_shape=tuple(out_shape),
        compiler_params=pltpu.CompilerParams(
            dimension_semantics=("parallel", "parallel"),
            vmem_limit_bytes=vmem_limit),
        cost_estimate=cost,
    )(q_in, keys, values)

    if not isinstance(outs, (tuple, list)):
        outs = (outs,)

    V = outs[0]
    if L_pad != L:
        V = V[:, :L]
    if return_attention:
        A = outs[1]
        if L_pad != L:
            A = A[:, :L]
        return V, A
    return V


def _reference(queries, keys, values, scale=None):
    B, L, E = queries.shape
    scale = scale if scale is not None else 1.0 / math.sqrt(E)
    scores = jnp.einsum('ble,bse->bls', queries, keys)
    A = jax.nn.softmax(scale * scores, axis=-1)
    V = jnp.einsum('bls,bsd->bld', A, values)
    return V, A


if __name__ == "__main__":
    key = jax.random.PRNGKey(0)
    B, L, S, E, D = 2, 16, 16, 32, 32
    kq, kk, kv = jax.random.split(key, 3)
    queries = jax.random.normal(kq, (B, L, E), dtype=jnp.float32)
    keys = jax.random.normal(kk, (B, S, E), dtype=jnp.float32)
    values = jax.random.normal(kv, (B, S, D), dtype=jnp.float32)

    V_ref, A_ref = _reference(queries, keys, values)

    # Module-faithful path: returns (V, A).  block_l=8 exercises the tiled-L
    # grid (2 L-tiles per batch) at these small shapes.
    V, A = full_attention(queries, keys, values, block_l=8)
    jax.block_until_ready((V, A))
    assert V.shape == (B, L, D) and A.shape == (B, L, S)
    assert jnp.allclose(V, V_ref, atol=1e-4, rtol=1e-4)
    assert jnp.allclose(A, A_ref, atol=1e-4, rtol=1e-4)

    # Auto block_l path (single L tile here).
    V1, A1 = full_attention(queries, keys, values)
    jax.block_until_ready((V1, A1))
    assert jnp.allclose(V1, V_ref, atol=1e-4, rtol=1e-4)
    assert jnp.allclose(A1, A_ref, atol=1e-4, rtol=1e-4)

    # A-dropped fast path (normalization folded after the PV matmul).
    V_only = full_attention(queries, keys, values, return_attention=False)
    jax.block_until_ready(V_only)
    assert jnp.allclose(V_only, V_ref, atol=1e-4, rtol=1e-4)

    # Non-divisible L (padded-tail path).
    L2 = 12
    q2 = queries[:, :L2]
    V2, A2 = full_attention(q2, keys, values, block_l=8)
    jax.block_until_ready((V2, A2))
    V2_ref, A2_ref = _reference(q2, keys, values)
    assert V2.shape == (B, L2, D) and A2.shape == (B, L2, S)
    assert jnp.allclose(V2, V2_ref, atol=1e-4, rtol=1e-4)
    assert jnp.allclose(A2, A2_ref, atol=1e-4, rtol=1e-4)

    # bf16 A-output path (halves the dominant HBM writeback).
    V_bf, A_bf = full_attention(queries, keys, values,
                                attn_dtype=jnp.bfloat16)
    jax.block_until_ready((V_bf, A_bf))
    assert A_bf.dtype == jnp.bfloat16
    assert jnp.allclose(V_bf, V_ref, atol=1e-4, rtol=1e-4)
    assert jnp.allclose(A_bf.astype(jnp.float32), A_ref, atol=2e-2, rtol=2e-2)

    # bf16 compute opt-in (MXU-fast path, f32 accumulation).
    V_c = full_attention(queries, keys, values, return_attention=False,
                         compute_dtype=jnp.bfloat16)
    jax.block_until_ready(V_c)
    assert jnp.allclose(V_c, V_ref, atol=5e-2, rtol=5e-2)

    print("KERNEL_OK")
</pallas_src>

<mosaic_0001>
module attributes {stable_mosaic.version = 11 : i64} {
  func.func @_full_attention_kernel(%arg0: i32, %arg1: i32, %arg2: memref<1x8x32xf32, #tpu.memory_space<vmem>>, %arg3: memref<1x16x32xf32, #tpu.memory_space<vmem>>, %arg4: memref<1x16x32xf32, #tpu.memory_space<vmem>>, %arg5: memref<1x8x32xf32, #tpu.memory_space<vmem>>, %arg6: memref<1x8x16xf32, #tpu.memory_space<vmem>>) attributes {dimension_semantics = [#tpu.dimension_semantics<parallel>, #tpu.dimension_semantics<parallel>], iteration_bounds = array<i64: 2, 2>, scalar_prefetch = 0 : i64, scratch_operands = 0 : i64, tpu.core_type = #tpu.core_type<tc>, window_params = [{transform_indices = @transform_0, window_bounds = array<i64: 1, 8, 32>}, {transform_indices = @transform_1, window_bounds = array<i64: 1, 16, 32>}, {transform_indices = @transform_2, window_bounds = array<i64: 1, 16, 32>}, {transform_indices = @transform_3, window_bounds = array<i64: 1, 8, 32>}, {transform_indices = @transform_4, window_bounds = array<i64: 1, 8, 16>}]} {
    %c0 = arith.constant 0 : index
    %c0_0 = arith.constant 0 : index
    %c0_1 = arith.constant 0 : index
    %0 = vector.load %arg2[%c0, %c0_0, %c0_1] : memref<1x8x32xf32, #tpu.memory_space<vmem>>, vector<1x8x32xf32>
    %1 = vector.shape_cast %0 : vector<1x8x32xf32> to vector<8x32xf32>
    %cst = arith.constant 0.176776692 : f32
    %2 = vector.broadcast %cst : f32 to vector<8x32xf32>
    %3 = arith.mulf %1, %2 : vector<8x32xf32>
    %c0_2 = arith.constant 0 : index
    %c0_3 = arith.constant 0 : index
    %c0_4 = arith.constant 0 : index
    %4 = vector.load %arg3[%c0_2, %c0_3, %c0_4] : memref<1x16x32xf32, #tpu.memory_space<vmem>>, vector<1x16x32xf32>
    %5 = vector.shape_cast %4 : vector<1x16x32xf32> to vector<16x32xf32>
    %c0_5 = arith.constant 0 : index
    %c0_6 = arith.constant 0 : index
    %c0_7 = arith.constant 0 : index
    %6 = vector.load %arg4[%c0_5, %c0_6, %c0_7] : memref<1x16x32xf32, #tpu.memory_space<vmem>>, vector<1x16x32xf32>
    %7 = vector.shape_cast %6 : vector<1x16x32xf32> to vector<16x32xf32>
    %cst_8 = arith.constant dense<0.000000e+00> : vector<8x16xf32>
    %8 = tpu.matmul %3, %5, %cst_8 {dimension_numbers = #tpu.dot_dimension_numbers<[1], [1], [0], [0], [0, 0, 1, 0], [], []>} : vector<8x32xf32>, vector<16x32xf32>, vector<8x16xf32> -> vector<8x16xf32>
    %cst_9 = arith.constant dense<0xFF800000> : vector<8xf32>
    %9 = vector.multi_reduction <maximumf>, %8, %cst_9 [1] : vector<8x16xf32> to vector<8xf32>
    %10 = vector.shape_cast %9 : vector<8xf32> to vector<8x1xf32>
    %11 = vector.broadcast %10 : vector<8x1xf32> to vector<8x16xf32>
    %12 = arith.subf %8, %11 : vector<8x16xf32>
    %13 = math.exp %12 : vector<8x16xf32>
    %cst_10 = arith.constant dense<0.000000e+00> : vector<8xf32>
    %14 = vector.multi_reduction <add>, %13, %cst_10 [1] : vector<8x16xf32> to vector<8xf32>
    %15 = vector.shape_cast %14 : vector<8xf32> to vector<8x1xf32>
    %16 = tpu.reciprocal %15 {approx = true} : vector<8x1xf32> -> vector<8x1xf32>
    %17 = arith.mulf %15, %16 : vector<8x1xf32>
    %cst_11 = arith.constant 2.000000e+00 : f32
    %18 = vector.broadcast %cst_11 : f32 to vector<8x1xf32>
    %19 = arith.subf %18, %17 : vector<8x1xf32>
    %20 = arith.mulf %16, %19 : vector<8x1xf32>
    %21 = vector.broadcast %20 : vector<8x1xf32> to vector<8x16xf32>
    %22 = arith.mulf %13, %21 : vector<8x16xf32>
    %c0_12 = arith.constant 0 : index
    %c0_13 = arith.constant 0 : index
    %c0_14 = arith.constant 0 : index
    %23 = vector.load %arg6[%c0_12, %c0_13, %c0_14] : memref<1x8x16xf32, #tpu.memory_space<vmem>>, vector<1x8x16xf32>
    %24 = vector.shape_cast %23 : vector<1x8x16xf32> to vector<8x16xf32>
    %25 = vector.shape_cast %22 : vector<8x16xf32> to vector<1x8x16xf32>
    tpu.vector_store %arg6[%c0_12, %c0_13, %c0_14], %25 {strides = array<i32>} : memref<1x8x16xf32, #tpu.memory_space<vmem>>, vector<1x8x16xf32>,
    %cst_15 = arith.constant dense<0.000000e+00> : vector<8x32xf32>
    %26 = tpu.matmul %22, %7, %cst_15 {dimension_numbers = #tpu.dot_dimension_numbers<[1], [0], [0], [1], [0, 0, 1, 1], [], []>} : vector<8x16xf32>, vector<16x32xf32>, vector<8x32xf32> -> vector<8x32xf32>
    %c0_16 = arith.constant 0 : index
    %c0_17 = arith.constant 0 : index
    %c0_18 = arith.constant 0 : index
    %27 = vector.load %arg5[%c0_16, %c0_17, %c0_18] : memref<1x8x32xf32, #tpu.memory_space<vmem>>, vector<1x8x32xf32>
    %28 = vector.shape_cast %27 : vector<1x8x32xf32> to vector<8x32xf32>
    %29 = vector.shape_cast %26 : vector<8x32xf32> to vector<1x8x32xf32>
    tpu.vector_store %arg5[%c0_16, %c0_17, %c0_18], %29 {strides = array<i32>} : memref<1x8x32xf32, #tpu.memory_space<vmem>>, vector<1x8x32xf32>,
    return
  }
  func.func @transform_0(%arg0: i32, %arg1: i32) -> (i32, i32, i32) {
    %c0_i32 = arith.constant 0 : i32
    %c0_i32_0 = arith.constant 0 : i32
    return %arg0, %arg1, %c0_i32 : i32, i32, i32
  }
  func.func @transform_1(%arg0: i32, %arg1: i32) -> (i32, i32, i32) {
    %c0_i32 = arith.constant 0 : i32
    %c0_i32_0 = arith.constant 0 : i32
    %c0_i32_1 = arith.constant 0 : i32
    return %arg0, %c0_i32, %c0_i32_0 : i32, i32, i32
  }
  func.func @transform_2(%arg0: i32, %arg1: i32) -> (i32, i32, i32) {
    %c0_i32 = arith.constant 0 : i32
    %c0_i32_0 = arith.constant 0 : i32
    %c0_i32_1 = arith.constant 0 : i32
    return %arg0, %c0_i32, %c0_i32_0 : i32, i32, i32
  }
  func.func @transform_3(%arg0: i32, %arg1: i32) -> (i32, i32, i32) {
    %c0_i32 = arith.constant 0 : i32
    %c0_i32_0 = arith.constant 0 : i32
    return %arg0, %arg1, %c0_i32 : i32, i32, i32
  }
  func.func @transform_4(%arg0: i32, %arg1: i32) -> (i32, i32, i32) {
    %c0_i32 = arith.constant 0 : i32
    %c0_i32_0 = arith.constant 0 : i32
    return %arg0, %arg1, %c0_i32 : i32, i32, i32
  }
}

</mosaic_0001>

<bundles_post_ra>
// kernel: tpu_custom_call.1
= control target key start
LH: loop header
LB: loop body
LE: loop exit
PB: predicated region body
PF: predicated region fallthrough
CT: control target
= control target key end

     0   :  { %s1569_s0 = inlined_call_operand.hbm [shape: f32[2,16,32], index: 0, kind: input, shape index: {}]   ;;  %s1570_s1 = inlined_call_operand.hbm [shape: f32[2,16,32], index: 1, kind: input, shape index: {}]   ;;  %s1571_s2 = inlined_call_operand.hbm [shape: f32[2,16,32], index: 2, kind: input, shape index: {}]   ;;  %s1572_s3 = inlined_call_operand.hbm [shape: f32[2,16,32], index: 3, kind: output, shape index: {0}]   ;;  %s1573_s4 = inlined_call_operand.hbm [shape: f32[2,16,16], index: 4, kind: output, shape index: {1}]  }
   0x1   :  { %1588 = sst [smem:[#allocation22_spill]] %s1570_s1 }
   0x2   :  { %1589 = sst [smem:[#allocation23_spill]] %s1572_s3 }
   0x3   :  { %1590 = sst [smem:[#allocation24_spill]] %s1573_s4 }
   0x4   :  { %10 = vsyncpa [#allocation3], 0 }
   0x5   :  { %12 = vsyncpa [#allocation3 + $0x1], 0 }
   0x6   :  { %13 = vsyncpa [#allocation6], 0 }
   0x7   :  { %15 = vsyncpa [#allocation6 + $0x1], 0 }
   0x8   :  { %16 = vsyncpa [#allocation4], 0 }
   0x9   :  { %18 = vsyncpa [#allocation4 + $0x1], 0 }
   0xa   :  { %19 = vsyncpa [#allocation10], 0 }
   0xb   :  { %21 = vsyncpa [#allocation10 + $0x1], 0  ;;  %s1166_s15 = smov 0   ;;  %s1168_s16 = smov 0  }
   0xc   :  { %s1170_s17 = smov 0   ;;  %s1172_s18 = smov 0  }
   0xd   :  { %s1174_s19 = smov 0   ;;  %s1176_s20 = smov 0  }
   0xe   :  { %s1178_s21 = smov 0   ;;  %s1180_s22 = smov 0  }
   0xf   :  { %s1182_s23 = smov 0   ;;  %s1184_s24 = smov 0  }
  0x10   :  { %s1186_s25 = smov 0  }
  0x11 LB: > { %1591 = sst [smem:[#allocation15_spill]] %s1113_s21  ;;  %p56_p0 = scmp.eq.s32.totalorder %s1129_s25, 0  ;;  %s1129_s25 = sphi %s1186_s25, %s27_s25   ;;  %s1125_s24 = sphi %s1184_s24, %s1636_s24   ;;  %s1121_s23 = sphi %s1182_s23, %s1635_s23   ;;  %s1117_s22 = sphi %s1180_s22, %s1634_s22   ;;  %s1113_s21 = sphi %s1178_s21, %s1633_s21   ;;  %s1109_s20 = sphi %s1176_s20, %s1632_s20   ;;  %s1105_s19 = sphi %s1174_s19, %s1631_s19   ;;  %s1101_s18 = sphi %s1172_s18, %s1630_s18   ;;  %s1097_s17 = sphi %s1170_s17, %s1629_s17   ;;  %s1093_s16 = sphi %s1168_s16, %s1628_s16   ;;  %s1089_s15 = sphi %s1166_s15, %s1627_s15  }
  0x12   : > { %1592 = sst [smem:[#allocation16_spill]] %s1117_s22  ;;  %p81_p1 = scmp.ne.s32.totalorder %s1097_s17, %s1093_s16 }
  0x13   : > { %p1574_p4 = scmp.lt.s32.totalorder %s1129_s25, 4  ;;  %s213_s26 = sand.u32 1, %s1129_s25  }
  0x14   : > { %p83_p3 = por %p81_p1, %p56_p0  ;;  %s215_s27 = sand.u32 1, %s1097_s17  }
  0x15   : > { %s1231_s28 = sshll.u32 %s215_s27, 4  ;;  %s726_s29 = sshll.u32 %s1125_s24, 8 }
  0x16   : > { %s1593_s1 = sld [smem:[#allocation22_spill]]  ;;  %s217_s7 = scalar_lea.vmem [#allocation5], %s1231_s28 }
  0x17   : > { %s224_s8 = sshll.u32 %s217_s7, 4  ;;  %p1246_p5 = pnand %p1574_p4, %p83_p3  ;;  %s1242_s8 = int_to_ptr.vmem [resolvable:$true] %s224_s8 }
  0x18   : > { %s1250_s10 = scalar_lea.sflag [#allocation6], %s213_s26 }
  0x19   : > { %p1579_p7 = pneg %p1246_p5 }
  0x1c   : > { %s1239_s6 = scalar_lea.hbm %s1593_s1, %s726_s29  ;;  %s886_s14 = scalar_lea.hbm %s1593_s1, 512 }
  0x1d   : > { %s881_s11 = scalar_lea.hbm %s1239_s6, 256  ;;  %p887_p10 = scmp.lt.u32.totalorder %s1239_s6, %s1593_s1 }
  0x1e   : > { %p882_p6 = scmp.ne.s32.totalorder %s1239_s6, %s881_s11  ;;  %p888_p11 = scmp.lt.u32.totalorder %s886_s14, %s881_s11 }
  0x1f   : > { %p890_p13 = scmp.lt.u32.totalorder %s881_s11, %s1239_s6 }
  0x20   : > { %p884_p8 = pnand %p1579_p7, %p882_p6  ;;  %p889_p12 = por %p888_p11, %p887_p10 }
  0x22   : > { %p885_p9 = pneg %p884_p8  ;;  %p891_p1 = por %p890_p13, %p889_p12 }
  0x24   : > { %p892_p3 = pnand %p891_p1, %p885_p9 }
  0x26   : > { %895 = shalt.err (!%p892_p3)
}
  0x27   : > { %s896_s26 = scalar_lea.vmem %s1242_s8, 256  ;;  %s1131_s5 = smov [#allocation5]  }
  0x28   : > { %p897_p6 = scmp.ne.s32.totalorder %s1242_s8, %s896_s26  ;;  %s901_s7 = sshll.u32 %s1131_s5, 4  ;;  %s902_s7 = int_to_ptr.vmem [resolvable:$false] %s901_s7 }
  0x29   : > { %s903_s12 = scalar_lea.vmem %s902_s7, 512  ;;  %p904_p2 = scmp.lt.s32.totalorder %s1242_s8, %s902_s7 }
  0x2a   : > { %p899_p8 = pnand %p897_p6, %p1579_p7  ;;  %p905_p10 = scmp.lt.s32.totalorder %s903_s12, %s896_s26 }
  0x2c   : > { %p900_p4 = pneg %p899_p8  ;;  %p906_p11 = por %p905_p10, %p904_p2 }
  0x2e   : > { %p907_p12 = pnand %p906_p11, %p900_p4 }
  0x30   : > { %910 = shalt.err (!%p907_p12)
}
  0x31   : > { %s1575_s11 = smov 128   ;;  %s1576_s13 = smov 8  }
  0x32   : > { %771 = dma.hbm_to_vmem [thread:$0]  (!%p1246_p5), %s1239_s6, 256, %s1242_s8, %s1250_s10, %s1575_s11, %s1575_s11, %s1576_s13  }
  0x33   : > { %s1286_s30 = scalar_lea.hbm %s1571_s2, %s726_s29  ;;  %s238_s26 = scalar_lea.vmem [#allocation7], %s1231_s28 }
  0x34   : > { %s245_s5 = sshll.u32 %s238_s26, 4  ;;  %p708_p2 = scmp.ge.s32.totalorder %s1129_s25, 1  ;;  %s1289_s5 = int_to_ptr.vmem [resolvable:$true] %s245_s5 }
  0x35   : > { %p253_p4 = scmp.lt.s32.totalorder %s1129_s25, 5  ;;  %s1298_s8 = sadd.s32 4294967295, %s1129_s25  }
  0x36   : > { %s696_s29 = sadd.s32 4294967294, %s1129_s25   ;;  %s36_s28 = sadd.s32 1, %s1121_s23 }
  0x37   : > { %p1293_p9 = pnand %p708_p2, %p253_p4  ;;  %s39_s7 = sadd.s32 1, %s1125_s24 }
  0x38   : > { %p37_p13 = scmp.ge.s32.totalorder %s36_s28, 2  ;;  %s48_s12 = sadd.s32 1, %s1109_s20 }
  0x39   : > { %s1595_s6 = scalar_select %p1293_p9, 1, 0 }
  0x3a   : > { %p55_p1 = scmp.ne.s32.totalorder %s1109_s20, %s1105_s19  ;;  %p61_p3 = scmp.ne.s32.totalorder %s1105_s19, %s1101_s18 }
  0x3b   : > { %s1638_s28 = smov (%p37_p13, %s36_s28), 0  ;;  %s1640_s7 = smov (!%p37_p13, %s39_s7), %s1125_s24 }
  0x3c   : > { %1596 = sst [smem:[#allocation17_spill]] %s1638_s28  ;;  %s44_s14 = ssub.s32 %s1121_s23, %s1638_s28 }
  0x3d   : > { %p1318_p6 = por %p56_p0, %p55_p1  ;;  %p41_p8 = scmp.ge.s32.totalorder %s1640_s7, 2 }
  0x3e   : > { %p62_p10 = scmp.eq.s32.totalorder %s1298_s8, 0  ;;  %s74_s26 = sadd.s32 1, %s1097_s17 }
  0x3f   : > { %p139_p11 = scmp.eq.s32.totalorder %s1298_s8, 3  ;;  %s1642_s7 = smov (%p41_p8, %s1640_s7), 0 }
  0x40   : > { %1598 = sst [smem:[#allocation18_spill]] %s1642_s7  ;;  %p1330_p12 = por %p62_p10, %p61_p3 }
  0x41   : > { %p1600_p0 = scmp.ne.s32.totalorder %s1093_s16, %s1089_s15  ;;  %s43_s1 = ssub.s32 %s1125_s24, %s1642_s7 }
  0x42   : > { %s1599_s11 = scalar_select %p1330_p12, 1, 0 }
  0x43   : > { %p1337_p2 = por %p1600_p0, %p62_p10  ;;  %p1346_p4 = por %p139_p11, %p55_p1 }
  0x44   : > { %s45_s3 = sor.u32 %s44_s14, %s43_s1  ;;  %p72_p13 = scmp.eq.s32.totalorder %s43_s1, 0 }
  0x45   : > { %s1601_s13 = scalar_select %p1337_p2, 1, 0 }
  0x46   : > { %s1602_s28 = scalar_select %p1346_p4, 1, 0 }
  0x47   : > { %p46_p8 = scmp.eq.s32.totalorder %s45_s3, 0  ;;  %p145_p7 = scmp.eq.s32.totalorder %s696_s29, 3 }
  0x48   : > { %1603 = sst [smem:[#allocation19_spill]] %s1602_s28  ;;  %s1584_s28 = sand.u32 1, %s1109_s20  }
  0x49   : > { %s1351_s15 = scalar_select %p72_p13, %s1097_s17, %s74_s26  }
  0x4a   : > { %s1354_s4 = scalar_select %p46_p8, %s1109_s20, %s48_s12  }
  0x4b   : > { %1604 = sst [smem:[#allocation20_spill]] %s1351_s15  ;;  %p1359_p10 = por %p145_p7, %p61_p3 }
  0x4c   : > { %1605 = sst [smem:[#allocation21_spill]] %s1354_s4  ;;  %s699_s14 = sshll.u32 %s1584_s28, 3 }
  0x4d   : > { %s1606_s7 = scalar_select %p1359_p10, 1, 0 }
  0x4e   : > { %s700_s21 = sshll.u32 %s1125_s24, 1  ;;  %s197_s3 = scalar_lea.vmem [#allocation2], %s699_s14 }
  0x4f   : > { %s202_s1 = sadd.s32 %s1121_s23, %s700_s21  ;;  %s206_s22 = sshll.u32 %s197_s3, 4  ;;  %s1368_s22 = int_to_ptr.vmem [resolvable:$true] %s206_s22 }
  0x50   : > { %s701_s29 = sshll.u32 %s202_s1, 7  ;;  %p1607_p7 = scmp.lt.s32.totalorder %s1129_s25, 4 }
  0x51   : > { %s1373_s4 = scalar_lea.hbm %s1569_s0, %s701_s29  ;;  %s911_s28 = scalar_lea.hbm %s1286_s30, 256 }
  0x52   : > { %p1379_p1 = pnand %p1607_p7, %p1318_p6  ;;  %p912_p3 = scmp.ne.s32.totalorder %s1286_s30, %s911_s28 }
  0x53   : > { %p1609_p11 = pneg %p1246_p5  ;;  %s916_s1 = scalar_lea.hbm %s1571_s2, 512 }
  0x54   : > { %p917_p8 = scmp.lt.u32.totalorder %s1286_s30, %s1571_s2  ;;  %p918_p10 = scmp.lt.u32.totalorder %s916_s1, %s911_s28 }
  0x55   : > { %p914_p0 = pnand %p912_p3, %p1609_p11  ;;  %p920_p6 = scmp.lt.u32.totalorder %s911_s28, %s1286_s30 }
  0x56   : > { %p919_p4 = por %p918_p10, %p917_p8 }
  0x57   : > { %p915_p13 = pneg %p914_p0 }
  0x58   : > { %p921_p7 = por %p920_p6, %p919_p4 }
  0x5a   : > { %p922_p2 = pnand %p921_p7, %p915_p13 }
  0x5c   : > { %925 = shalt.err (!%p922_p2)
}
  0x5d   : > { %s926_s27 = scalar_lea.vmem %s1289_s5, 256  ;;  %s1134_s29 = smov [#allocation7]  }
  0x5e   : > { %p927_p3 = scmp.ne.s32.totalorder %s1289_s5, %s926_s27  ;;  %s931_s12 = sshll.u32 %s1134_s29, 4  ;;  %s932_s12 = int_to_ptr.vmem [resolvable:$false] %s931_s12 }
  0x5f   : > { %s933_s21 = scalar_lea.vmem %s932_s12, 512  ;;  %p934_p9 = scmp.lt.s32.totalorder %s1289_s5, %s932_s12 }
  0x60   : > { %p929_p0 = pnand %p927_p3, %p1609_p11  ;;  %p935_p10 = scmp.lt.s32.totalorder %s933_s21, %s926_s27 }
  0x62   : > { %p930_p12 = pneg %p929_p0  ;;  %p936_p8 = por %p935_p10, %p934_p9 }
  0x64   : > { %p937_p4 = pnand %p936_p8, %p930_p12 }
  0x66   : > { %940 = shalt.err (!%p937_p4)
}
  0x67   : > { %s1610_s28 = smov 8   ;;  %s1611_s14 = smov 128  }
  0x68   : > { %774 = dma.hbm_to_vmem [thread:$0]  (!%p1246_p5), %s1286_s30, 256, %s1289_s5, %s1250_s10, %s1611_s14, %s1611_s14, %s1610_s28  }
  0x69   : > { %s1612_s1 = sand.u32 1, %s1109_s20   ;;  %s941_s26 = scalar_lea.hbm %s1373_s4, 128 }
  0x6a   : > { %s194_s3 = scalar_lea.sflag [#allocation3], %s1612_s1  ;;  %p942_p9 = scmp.ne.s32.totalorder %s1373_s4, %s941_s26 }
  0x6b   : > { %p943_p12 = pneg %p1379_p1  ;;  %s946_s29 = scalar_lea.hbm %s1569_s0, 512 }
  0x6c   : > { %p947_p6 = scmp.lt.u32.totalorder %s1373_s4, %s1569_s0  ;;  %p948_p7 = scmp.lt.u32.totalorder %s946_s29, %s941_s26 }
  0x6d   : > { %p944_p2 = pnand %p943_p12, %p942_p9  ;;  %p950_p3 = scmp.lt.u32.totalorder %s941_s26, %s1373_s4 }
  0x6e   : > { %p949_p5 = por %p948_p7, %p947_p6 }
  0x6f   : > { %p945_p13 = pneg %p944_p2 }
  0x70   : > { %p951_p11 = por %p950_p3, %p949_p5 }
  0x72   : > { %p952_p0 = pnand %p951_p11, %p945_p13 }
  0x74   : > { %955 = shalt.err (!%p952_p0)
}
  0x75   : > { %s956_s10 = scalar_lea.vmem %s1368_s22, 128  ;;  %s1135_s30 = smov [#allocation2]  }
  0x76   : > { %p957_p10 = scmp.ne.s32.totalorder %s1368_s22, %s956_s10  ;;  %s961_s5 = sshll.u32 %s1135_s30, 4  ;;  %s962_s5 = int_to_ptr.vmem [resolvable:$false] %s961_s5 }
  0x77   : > { %s963_s28 = scalar_lea.vmem %s962_s5, 256  ;;  %p964_p9 = scmp.lt.s32.totalorder %s1368_s22, %s962_s5 }
  0x78   : > { %p959_p8 = pnand %p957_p10, %p943_p12  ;;  %p965_p2 = scmp.lt.s32.totalorder %s963_s28, %s956_s10 }
  0x7a   : > { %p960_p4 = pneg %p959_p8  ;;  %p966_p6 = por %p965_p2, %p964_p9 }
  0x7c   : > { %p967_p7 = pnand %p966_p6, %p960_p4 }
  0x7e   : > { %970 = shalt.err (!%p967_p7)
}
  0x7f   : > { %768 = dma.hbm_to_vmem [thread:$0]  (!%p1379_p1), %s1373_s4, 128, %s1368_s22, %s194_s3  }
  0x80   : > { %p1613_p13 = scmp.ne.s32.totalorder %s1595_s6, 0 }
  0x81   : > { %s1440_s14 = sand.u32 (!%p1613_p13), 1, %s1105_s19   ;;  %p1614_p12 = scmp.ne.s32.totalorder (!%p1613_p13), %s1599_s11, 0 }
  0x82   : > { %257 = sbr.rel (%p1613_p13) target bundleno = 912 (0x390), region = 32  ;;  %s1443_s1 = sshll.u32 (!%p1613_p13), %s1440_s14, 3 }
  0x83   : > { %s260_s26 = scalar_lea.sflag (!%p1613_p13), [#allocation3], %s1440_s14  ;;  %s263_s9 = scalar_lea.vmem (!%p1613_p13), [#allocation2], %s1443_s1 }
  0x89   : > { %1072 = dma.done.wait (%p1614_p12), %s260_s26, 128  }
  0x8a   : > { %1074 = vsyncadd (%p1614_p12), %s260_s26, 4294967168  ;;  %s268_s4 = sand.u32 1, %s1298_s8   ;;  %s270_s22 = sand.u32 1, %s1093_s16  }
  0x8b   : > { %s1453_s6 = sshll.u32 %s270_s22, 4  ;;  %s269_s15 = scalar_lea.sflag [#allocation6], %s268_s4 }
  0x8c   : > { %s272_s3 = scalar_lea.vmem [#allocation5], %s1453_s6  ;;  %p1615_p1 = scmp.ne.s32.totalorder %s1601_s13, 0 }
  0x8e   : > { %1076 = dma.done.wait (%p1615_p1), %s269_s15, 512  }
  0x8f   : > { %1078 = vsyncadd (%p1615_p1), %s269_s15, 4294966784  ;;  %v1136_v0 = vmov 0.0|0.0   ;;  %vm1137_vm0 = vmmov 0   ;;  %v1138_v1 = vmov 0.0   ;;  %vm327_vm1 = vcmask 261120   ;;  %v323_v2 = vld [vmem:[%s272_s3] sm:$0xff] }
  0x90   : > { %748 = vmatprep.subr.bf16.mxu0 %v1136_v0  ;;  %738 = vmatprep.mubr.msk.f32.mxu0 %vm1137_vm0, %v1138_v1  ;;  %v324_v3 = vld [vmem:[%s272_s3 + $0x8] sm:$0xff]  ;;  %vm750_vm2 = vmpackc.low %vm327_vm1, %vm327_vm1  ;;  %vm407_vm3 = vcmask 130048   ;;  %s1616_s11 = sld [smem:[#allocation16_spill]]  ;;  %s281_s13 = scalar_lea.vmem [#allocation7], %s1453_s6 }
  0x91   : > { %752 = vmatprep.subr.bf16.mxu1 %v1136_v0  ;;  %745 = vmatprep.mubr.msk.f32.mxu1 %vm1137_vm0, %v1138_v1  ;;  %v749_v4 = vpack.c.bf16 %v324_v3, %v323_v2  ;;  %v321_v5 = vld [vmem:[%s263_s9] sm:$0xff]  ;;  %s1617_s8 = sld [smem:[#allocation15_spill]]  ;;  %v325_v15 = vld [vmem:[%s281_s13] sm:$0xff]  ;;  %s1618_s27 = sld [smem:[#allocation19_spill]] }
  0x92   : > { %v322_v6 = vmul.f32 0.17677669, %v321_v5  ;;  %v326_v16 = vld [vmem:[%s281_s13 + $0x8] sm:$0xff]  ;;  %s320_s29 = scalar_lea.vmem [#allocation9], %s1443_s1  ;;  %s1619_s28 = sld [smem:[#allocation24_spill]] }
  0x93   : > { %751 = vmatpush3.bf16.xpose.msk.msra.mxu0 %vm750_vm2, %v749_v4  ;;  %v753_v17 = vpack.c.bf16 %v326_v16, %v325_v15  ;;  %s533_s9 = sshll.u32 %s320_s29, 4  ;;  %s503_s4 = scalar_lea.sflag [#allocation10], %s1440_s14  ;;  %s534_s9 = int_to_ptr.vmem [resolvable:$true] %s533_s9 }
  0x94   : > { %s971_s22 = scalar_lea.vmem %s534_s9, 128  ;;  %s1139_s6 = smov [#allocation9]  }
  0x95   : > { %754 = vmatpush3.bf16.msra.mxu1 %v753_v17  ;;  %p972_p5 = scmp.ne.s32.totalorder %s534_s9, %s971_s22  ;;  %s975_s15 = sshll.u32 %s1139_s6, 4  ;;  %s976_s15 = int_to_ptr.vmem [resolvable:$false] %s975_s15 }
  0x96   : > { %s720_s12 = sshll.u32 %s1616_s11, 1  ;;  %s977_s3 = scalar_lea.vmem %s976_s15, 256 }
  0x97   : > { %s1471_s21 = sadd.s32 %s1617_s8, %s720_s12  ;;  %p1620_p3 = scmp.ne.s32.totalorder %s1618_s27, 0 }
  0x98   : > { %s721_s10 = sshll.u32 %s1471_s21, 7  ;;  %p978_p10 = scmp.lt.s32.totalorder %s534_s9, %s976_s15 }
  0x99   : > { %s1479_s26 = scalar_lea.hbm %s1619_s28, %s721_s10  ;;  %p973_p11 = pnand %p972_p5, %p1620_p3 }
  0x9a   : > { %739 = vmatmul.mubr.msk.f32.vlgmr.msra.gmra.mrb[0].mxu0 %vm327_vm1, %v322_v6  ;;  %p979_p8 = scmp.lt.s32.totalorder %s977_s3, %s971_s22 }
  0x9b   : > { %p974_p0 = pneg %p973_p11 }
  0x9c   : > { %p980_p4 = por %p979_p8, %p978_p10 }
  0x9e   : > { %p981_p9 = pnand %p980_p4, %p974_p0 }
 0x16d   : > { %v403_v7 = vpop.f32.mrb[0].mxu0 }
 0x16e   : > { %v740_v8 = vpop.f32.mrb[1].mxu0  ;;  %v408_v9 = vsel %vm407_vm3, %v403_v7, -inf }
 0x16f   : > { %409 = vmax.xlane.f32.xlu0 %v408_v9 }
 0x1fc   : > { %v410_v10 = vpop.xlane.xlu0 %409 }
 0x1fd   : > { %v411_v11 = vsub.f32 %v403_v7, %v410_v10 }
 0x1ff   : > { %v412_v12 = vmul.f32 1.442695, %v411_v11 }
 0x201   : > { %877 = vpow2.f32 %v412_v12 }
 0x20b   : > { %v878_v13 = vpop.eup %877 }
 0x20c   : > { %v414_v14 = vsel %vm407_vm3, %v878_v13, 0.0 }
 0x20d   : > { %415 = vadd.xlane.f32.xlu0 %v414_v14 }
 0x29a   : > { %v416_v18 = vpop.xlane.xlu0 %415 }
 0x29b   : > { %879 = vrcp.f32 %v416_v18 }
 0x2a5   : > { %v880_v19 = vpop.eup %879 }
 0x2a6   : > { %v418_v20 = vmul.f32 %v880_v19, %v416_v18 }
 0x2a8   : > { %v419_v21 = vsub.f32 2.0, %v418_v20 }
 0x2aa   : > { %v420_v22 = vmul.f32 %v880_v19, %v419_v21 }
 0x2ac   : > { %v421_v23 = vmul.f32 %v878_v13, %v420_v22 }
 0x2ae   : > { %746 = vmatmul.mubr.msk.f32.vlgmr.msra.gmra.mrb[0].mxu1 %vm407_vm3, %v421_v23  ;;  %422 = vst.msk [vmem:[%s320_s29] sm:$0xff] %vm407_vm3, %v421_v23 }
 0x2af   : > { %984 = shalt.err (!%p981_p9)
}
 0x2b0   : > { %s985_s11 = scalar_lea.hbm %s1479_s26, 128  ;;  %s989_s29 = scalar_lea.hbm %s1619_s28, 512 }
 0x2b1   : > { %p986_p2 = scmp.ne.s32.totalorder %s1479_s26, %s985_s11  ;;  %p990_p13 = scmp.lt.u32.totalorder %s1479_s26, %s1619_s28 }
 0x2b2   : > { %p991_p12 = scmp.lt.u32.totalorder %s989_s29, %s985_s11  ;;  %p993_p5 = scmp.lt.u32.totalorder %s985_s11, %s1479_s26 }
 0x2b3   : > { %p987_p6 = pnand %p986_p2, %p1620_p3 }
 0x2b4   : > { %p992_p1 = por %p991_p12, %p990_p13 }
 0x2b5   : > { %p988_p7 = pneg %p987_p6 }
 0x2b6   : > { %p994_p11 = por %p993_p5, %p992_p1 }
 0x2b8   : > { %p995_p0 = pnand %p994_p11, %p988_p7 }
 0x2ba   : > { %998 = shalt.err (!%p995_p0)
}
 0x2bb   : > { %762 = dma.vmem_to_hbm [thread:$0]  (%p1620_p3), %s534_s9, 128, %s1479_s26, %s503_s4  }
 0x2bc   : > { %s313_s5 = scalar_lea.vmem [#allocation8], %s1443_s1  ;;  %s1621_s3 = sld [smem:[#allocation23_spill]] }
 0x2bd   : > { %s518_s22 = sshll.u32 %s313_s5, 4  ;;  %s498_s11 = scalar_lea.sflag [#allocation4], %s1440_s14  ;;  %s1507_s22 = int_to_ptr.vmem [resolvable:$true] %s518_s22 }
 0x2be   : > { %s999_s8 = scalar_lea.vmem %s1507_s22, 128  ;;  %s1140_s1 = smov [#allocation8]  }
 0x2bf   : > { %p1000_p10 = scmp.ne.s32.totalorder %s1507_s22, %s999_s8  ;;  %s1003_s21 = sshll.u32 %s1140_s1, 4  ;;  %s1004_s21 = int_to_ptr.vmem [resolvable:$false] %s1003_s21 }
 0x2c0   : > { %p1006_p9 = scmp.lt.s32.totalorder %s1507_s22, %s1004_s21 }
 0x2c1   : > { %p1001_p8 = pnand %p1000_p10, %p1620_p3 }
 0x2c2   : > { %s1505_s13 = scalar_lea.hbm %s1621_s3, %s721_s10  ;;  %s1005_s10 = scalar_lea.vmem %s1004_s21, 256 }
 0x2c3   : > { %p1002_p4 = pneg %p1001_p8  ;;  %p1007_p2 = scmp.lt.s32.totalorder %s1005_s10, %s999_s8 }
 0x2c5   : > { %p1008_p6 = por %p1007_p2, %p1006_p9 }
 0x2c7   : > { %p1009_p7 = pnand %p1008_p6, %p1002_p4 }
 0x381   : > { %v492_v24 = vpop.f32.mrb[0].mxu1 }
 0x382   : > { %496 = vst.msk [vmem:[%s313_s5] sm:$0xff] %vm327_vm1, %v492_v24  ;;  %v747_v25 = vpop.f32.mrb[1].mxu1 }
 0x383   : > { %1012 = shalt.err (!%p1009_p7)
}
 0x384   : > { %s1013_s14 = scalar_lea.hbm %s1505_s13, 128  ;;  %s1017_s4 = scalar_lea.hbm %s1621_s3, 512 }
 0x385   : > { %p1014_p13 = scmp.ne.s32.totalorder %s1505_s13, %s1013_s14  ;;  %p1018_p5 = scmp.lt.u32.totalorder %s1505_s13, %s1621_s3 }
 0x386   : > { %p1019_p11 = scmp.lt.u32.totalorder %s1017_s4, %s1013_s14  ;;  %p1021_p10 = scmp.lt.u32.totalorder %s1013_s14, %s1505_s13 }
 0x387   : > { %p1015_p12 = pnand %p1014_p13, %p1620_p3 }
 0x388   : > { %p1020_p0 = por %p1019_p11, %p1018_p5 }
 0x389   : > { %p1016_p1 = pneg %p1015_p12 }
 0x38a   : > { %p1022_p8 = por %p1021_p10, %p1020_p0 }
 0x38c   : > { %p1023_p4 = pnand %p1022_p8, %p1016_p1 }
 0x38e   : > { %1026 = shalt.err (!%p1023_p4)
}
 0x38f   : > { %761 = dma.vmem_to_hbm [thread:$0]  (%p1620_p3), %s1507_s22, 128, %s1505_s13, %s498_s11  }
 0x390 PF: > { %p783_p9 = scmp.ge.s32.totalorder %s1129_s25, 2  ;;  %s545_s30 = sand.u32 1, %s1101_s18  }
 0x391   : > { %p1622_p2 = scmp.ne.s32.totalorder %s1606_s7, 0  ;;  %s546_s5 = scalar_lea.sflag [#allocation4], %s545_s30 }
 0x393   : > { %p776_p6 = pnand %p783_p9, %p1622_p2 }
 0x395   : > { %1080 = dma.done.wait (!%p776_p6), %s546_s5, 128  }
 0x396   : > { %1082 = vsyncadd (!%p776_p6), %s546_s5, 4294967168  ;;  %s555_s6 = scalar_lea.sflag [#allocation10], %s545_s30 }
 0x397   : > { %1084 = dma.done.wait (!%p776_p6), %s555_s6, 128  }
 0x398   : > { %1086 = vsyncadd (!%p776_p6), %s555_s6, 4294967168  ;;  %s27_s25 = sadd.s32 1, %s1129_s25   ;;  %s1623_s27 = sld [smem:[#allocation20_spill]] }
 0x399   : > { %p24_p7 = scmp.ge.s32.totalorder %s27_s25, 6   ;;  %s1624_s22 = sld [smem:[#allocation21_spill]] }
 0x39a   : > { %s1625_s13 = sld [smem:[#allocation17_spill]]  ;;  %s1626_s7 = sld [smem:[#allocation18_spill]] }
 0x39b   : > { %s1627_s15 = smov %s1093_s16  ;;  %s1628_s16 = smov %s1097_s17 }
 0x39c   : > { %s1630_s18 = smov %s1105_s19  ;;  %s1631_s19 = smov %s1109_s20 }
 0x39d   : > { %s1633_s21 = smov %s1121_s23  ;;  %26 = sbr.rel (!%p24_p7) target bundleno = 17 (0x11), region = 118 }
 0x39e   : > { %s1629_s17 = smov %s1623_s27 }
 0x39f   : > { %s1632_s20 = smov %s1624_s22  ;;  %s1634_s22 = smov %s1125_s24 }
 0x3a0   : > { %s1635_s23 = smov %s1625_s13  ;;  %s1636_s24 = smov %s1626_s7 }
 0x3a4   :  { %560 = vsyncpa [#allocation3], 1 }
 0x3a5   :  { %562 = vsyncpa [#allocation3 + $0x1], 1 }
 0x3a6   :  { %563 = vsyncpa [#allocation6], 1 }
 0x3a7   :  { %565 = vsyncpa [#allocation6 + $0x1], 1 }
 0x3a8   :  { %566 = vsyncpa [#allocation4], 1 }
 0x3a9   :  { %568 = vsyncpa [#allocation4 + $0x1], 1 }
 0x3aa   :  { %569 = vsyncpa [#allocation10], 1 }
 0x3ab   :  { %571 = vsyncpa [#allocation10 + $0x1], 1 }

</bundles_post_ra>
